<compile_context>
chip_gen: v7x
topology: tpu7x:2x2x1
jax: 0.10.0
libtpu: 0.0.40
codegen_flags: <defaults>
</compile_context>

<pallas_src>
import functools
import math

import jax
import jax.numpy as jnp
from jax.experimental import pallas as pl
from jax.experimental.pallas import tpu as pltpu


def _conv_relu_kernel(x_ref, w_ref, b_ref, o_ref, *, width):
    """One (batch, spatial-tile) block of ReLU(conv1x3(x) + b).

    x_ref: (1, C_in, TN)    TN = rows*width, tile start aligned to `width`
    w_ref: (3, C_out, C_in) taps ordered [x[w-1], x[w], x[w+1]]
    b_ref: (C_out, 1)
    o_ref: (1, C_out, TN)
    """
    x = x_ref[0]                                            # (C_in, TN)
    tn = x.shape[-1]

    # Column index of every lane within its image row.  The tile start is a
    # multiple of `width`, so it depends only on the lane index inside the
    # tile -> a rotate that wraps at the tile edge lands exactly on a lane
    # that gets masked to zero anyway (conv zero-padding at row edges).
    col = jax.lax.broadcasted_iota(jnp.int32, (1, tn), 1) % width

    zero = jnp.zeros((), x.dtype)
    # Left tap  x[w-1]: rotate right by one lane, zero at column 0.
    xl = jnp.where(col == 0, zero, pltpu.roll(x, shift=1, axis=1))
    # Right tap x[w+1]: rotate left by one lane (== rotate right by tn-1),
    # zero at the last column of each row.
    xr = jnp.where(col == width - 1, zero, pltpu.roll(x, shift=tn - 1, axis=1))

    acc = jnp.dot(w_ref[1], x, preferred_element_type=jnp.float32)
    acc = acc + jnp.dot(w_ref[0], xl, preferred_element_type=jnp.float32)
    acc = acc + jnp.dot(w_ref[2], xr, preferred_element_type=jnp.float32)
    acc = acc + b_ref[...].astype(jnp.float32)
    o_ref[0] = jnp.maximum(acc, 0.0).astype(o_ref.dtype)


def _vmem_budget_bytes():
    """Per-generation soft budget for the pipelined working set."""
    try:
        cap = pltpu.get_tpu_info().vmem_capacity_bytes
    except Exception:  # query unavailable -> assume the smallest (v7x: 64 MiB)
        cap = 64 << 20
    # ~1/4 of physical VMEM, capped: v5e/v6e -> 24 MiB, v7x -> 16 MiB.
    return int(max(8 << 20, min(cap // 4, 24 << 20)))


def _pick_rows_per_tile(n, c_in, c_out, h, w, itemsize, budget):
    """Image rows processed per grid step."""
    rows_align = 128 // math.gcd(w, 128)      # rows so that rows*w % 128 == 0
    # Per-row VMEM: double-buffered x + out blocks, plus in-kernel temps
    # (xl, xr in x dtype; f32 accumulator; iota/mask).
    per_row = w * (2 * c_in * itemsize + 2 * c_out * itemsize
                   + 2 * c_in * itemsize + (c_out + 1) * 4)
    fixed = 2 * (3 * c_in * c_out + c_out) * itemsize      # resident weight+bias
    max_rows = max(1, (budget - fixed) // per_row)

    # Candidates: divisors of H keeping TN a multiple of 128 (or full extent)
    # -> uniform tiles, unmasked lane-dense stores.
    cands = [d for d in range(1, h + 1)
             if h % d == 0 and (d % rows_align == 0 or d == h)]
    fitting = [d for d in cands if d <= max_rows]

    th = None
    if fitting:
        # Prefer >=4 total grid steps (v7x megacore + pipelining), then >=2,
        # otherwise just the largest tile that fits the budget.
        for min_steps in (4, 2):
            good = [d for d in fitting if n * (h // d) >= min_steps]
            if good:
                th = max(good)
                break
        if th is None:
            th = max(fitting)
    else:
        # No divisor fits: aligned, possibly ragged tiling (masked last tile).
        th = max(rows_align, (max_rows // rows_align) * rows_align)
        th = min(th, h)

    if (th * w) % 128 != 0 and th != h:       # legality safety net
        th = h
    return th


def conv_relu_1x3(x, weight, bias, *, vmem_budget_bytes=None, compute_dtype=None):
    """ReLU(Conv2d(kernel=(1,3), padding=(0,1))) over an NCHW input.

    x:      (N, C_in, H, W)
    weight: (C_out, C_in, 1, 3)   (torch nn.Conv2d layout, cross-correlation)
    bias:   (C_out,)
    returns (N, C_out, H, W)
    """
    n, c_in, h, w = x.shape
    c_out = weight.shape[0]
    assert weight.shape == (c_out, c_in, 1, 3), weight.shape
    hw = h * w

    # Contiguous spatial flatten (no relayout) -- HBM stays 1x read / 1x write.
    xf = x.reshape(n, c_in, hw)
    # Taps stacked on the leading axis, matching kernel order [w-1, w, w+1].
    w_stack = jnp.transpose(weight[:, :, 0, :], (2, 0, 1))   # (3, C_out, C_in)
    b_col = bias.reshape(c_out, 1)

    if compute_dtype is not None:  # optional bf16 streaming (halves read bytes)
        xf = xf.astype(compute_dtype)
        w_stack = w_stack.astype(compute_dtype)

    itemsize = jnp.dtype(xf.dtype).itemsize
    budget = vmem_budget_bytes or _vmem_budget_bytes()
    th = _pick_rows_per_tile(n, c_in, c_out, h, w, itemsize, budget)
    tn = th * w
    grid = (n, pl.cdiv(h, th))

    ws_est = (2 * (c_in + c_out) * tn * itemsize                 # I/O blocks (2x buf)
              + (2 * c_in * itemsize + (c_out + 1) * 4) * tn     # kernel temps
              + 2 * (3 * c_in * c_out + c_out) * itemsize)       # weight + bias
    vmem_limit = int(max(32 << 20, ws_est + (8 << 20)))

    out = pl.pallas_call(
        functools.partial(_conv_relu_kernel, width=w),
        out_shape=jax.ShapeDtypeStruct((n, c_out, hw), x.dtype),
        grid=grid,
        in_specs=[
            pl.BlockSpec((1, c_in, tn), lambda i, j: (i, 0, j)),
            pl.BlockSpec((3, c_out, c_in), lambda i, j: (0, 0, 0)),
            pl.BlockSpec((c_out, 1), lambda i, j: (0, 0)),
        ],
        out_specs=pl.BlockSpec((1, c_out, tn), lambda i, j: (i, 0, j)),
        compiler_params=pltpu.CompilerParams(
            dimension_semantics=("parallel", "parallel"),
            vmem_limit_bytes=vmem_limit),
    )(xf, w_stack, b_col)

    return out.reshape(n, c_out, h, w)


if __name__ == "__main__":
    key = jax.random.PRNGKey(0)
    k1, k2, k3 = jax.random.split(key, 3)

    N, C_IN, C_OUT, H, W = 2, 4, 8, 16, 16
    x = jax.random.normal(k1, (N, C_IN, H, W), dtype=jnp.float32)
    weight = 0.1 * jax.random.normal(k2, (C_OUT, C_IN, 1, 3), dtype=jnp.float32)
    bias = 0.1 * jax.random.normal(k3, (C_OUT,), dtype=jnp.float32)

    y = conv_relu_1x3(x, weight, bias)
    jax.block_until_ready(y)

    # pure-JAX reference: Conv2d((1,3), padding=(0,1)) + bias, then ReLU
    ref = jax.lax.conv_general_dilated(
        x, weight, window_strides=(1, 1), padding=((0, 0), (1, 1)),
        dimension_numbers=("NCHW", "OIHW", "NCHW"))
    ref = jnp.maximum(ref + bias[None, :, None, None], 0.0)

    assert y.shape == (N, C_OUT, H, W), y.shape
    assert jnp.allclose(y, ref, atol=1e-5, rtol=1e-5), float(
        jnp.max(jnp.abs(y - ref)))
    print("KERNEL_OK")
</pallas_src>

<mosaic_0001>
module attributes {stable_mosaic.version = 11 : i64} {
  func.func @_conv_relu_kernel(%arg0: i32, %arg1: i32, %arg2: memref<1x4x128xf32, #tpu.memory_space<vmem>>, %arg3: memref<3x8x4xf32, #tpu.memory_space<vmem>>, %arg4: memref<8x1xf32, #tpu.memory_space<vmem>>, %arg5: memref<1x8x128xf32, #tpu.memory_space<vmem>>) attributes {dimension_semantics = [#tpu.dimension_semantics<parallel>, #tpu.dimension_semantics<parallel>], iteration_bounds = array<i64: 2, 2>, scalar_prefetch = 0 : i64, scratch_operands = 0 : i64, tpu.core_type = #tpu.core_type<tc>, window_params = [{transform_indices = @transform_0, window_bounds = array<i64: 1, 4, 128>}, {pipeline_mode = #tpu.pipeline_mode<synchronous>, transform_indices = @transform_1, window_bounds = array<i64: 3, 8, 4>}, {pipeline_mode = #tpu.pipeline_mode<synchronous>, transform_indices = @transform_2, window_bounds = array<i64: 8, 1>}, {transform_indices = @transform_3, window_bounds = array<i64: 1, 8, 128>}]} {
    %c0 = arith.constant 0 : index
    %c0_0 = arith.constant 0 : index
    %c0_1 = arith.constant 0 : index
    %0 = vector.load %arg2[%c0, %c0_0, %c0_1] : memref<1x4x128xf32, #tpu.memory_space<vmem>>, vector<1x4x128xf32>
    %1 = vector.shape_cast %0 : vector<1x4x128xf32> to vector<4x128xf32>
    %2 = tpu.iota {dimensions = array<i32: 1>} : vector<1x128xi32>
    %c16_i32 = arith.constant 16 : i32
    %c0_i32 = arith.constant 0 : i32
    %3 = arith.cmpi eq, %c16_i32, %c0_i32 : i32
    %c1_i32 = arith.constant 1 : i32
    %4 = arith.select %3, %c1_i32, %c16_i32 : i32
    %5 = vector.broadcast %4 : i32 to vector<1x128xi32>
    %6 = arith.remsi %2, %5 : vector<1x128xi32>
    %c0_i32_2 = arith.constant 0 : i32
    %7 = vector.broadcast %c0_i32_2 : i32 to vector<1x128xi32>
    %8 = arith.cmpi ne, %6, %7 : vector<1x128xi32>
    %c0_i32_3 = arith.constant 0 : i32
    %9 = vector.broadcast %c0_i32_3 : i32 to vector<1x128xi32>
    %10 = arith.cmpi slt, %6, %9 : vector<1x128xi32>
    %c0_i32_4 = arith.constant 0 : i32
    %11 = arith.cmpi slt, %4, %c0_i32_4 : i32
    %12 = vector.broadcast %11 : i1 to vector<1x128xi1>
    %13 = vector.broadcast %12 : vector<1x128xi1> to vector<1x128xi1>
    %14 = arith.xori %10, %13 : vector<1x128xi1>
    %15 = arith.andi %14, %8 : vector<1x128xi1>
    %16 = vector.broadcast %4 : i32 to vector<1x128xi32>
    %17 = arith.addi %6, %16 : vector<1x128xi32>
    %18 = arith.select %15, %17, %6 : vector<1x128xi1>, vector<1x128xi32>
    %c0_i32_5 = arith.constant 0 : i32
    %19 = vector.broadcast %c0_i32_5 : i32 to vector<1x128xi32>
    %20 = arith.cmpi eq, %18, %19 : vector<1x128xi32>
    %c1_i32_6 = arith.constant 1 : i32
    %21 = tpu.dynamic_rotate %1 by %c1_i32_6 dim 1 : vector<4x128xf32>, i32 -> vector<4x128xf32>
    %cst = arith.constant 0.000000e+00 : f32
    %22 = vector.shape_cast %20 : vector<1x128xi1> to vector<1x128xi1>
    %23 = vector.broadcast %22 : vector<1x128xi1> to vector<4x128xi1>
    %24 = vector.broadcast %cst : f32 to vector<4x128xf32>
    %25 = arith.select %23, %24, %21 : vector<4x128xi1>, vector<4x128xf32>
    %c15_i32 = arith.constant 15 : i32
    %26 = vector.broadcast %c15_i32 : i32 to vector<1x128xi32>
    %27 = arith.cmpi eq, %18, %26 : vector<1x128xi32>
    %c127_i32 = arith.constant 127 : i32
    %28 = tpu.dynamic_rotate %1 by %c127_i32 dim 1 : vector<4x128xf32>, i32 -> vector<4x128xf32>
    %cst_7 = arith.constant 0.000000e+00 : f32
    %29 = vector.shape_cast %27 : vector<1x128xi1> to vector<1x128xi1>
    %30 = vector.broadcast %29 : vector<1x128xi1> to vector<4x128xi1>
    %31 = vector.broadcast %cst_7 : f32 to vector<4x128xf32>
    %32 = arith.select %30, %31, %28 : vector<4x128xi1>, vector<4x128xf32>
    %c1 = arith.constant 1 : index
    %c0_8 = arith.constant 0 : index
    %c0_9 = arith.constant 0 : index
    %33 = vector.load %arg3[%c1, %c0_8, %c0_9] : memref<3x8x4xf32, #tpu.memory_space<vmem>>, vector<1x8x4xf32>
    %34 = vector.shape_cast %33 : vector<1x8x4xf32> to vector<8x4xf32>
    %cst_10 = arith.constant dense<0.000000e+00> : vector<8x128xf32>
    %35 = tpu.matmul %34, %1, %cst_10 {dimension_numbers = #tpu.dot_dimension_numbers<[1], [0], [0], [1], [0, 0, 1, 1], [], []>} : vector<8x4xf32>, vector<4x128xf32>, vector<8x128xf32> -> vector<8x128xf32>
    %c0_11 = arith.constant 0 : index
    %c0_12 = arith.constant 0 : index
    %c0_13 = arith.constant 0 : index
    %36 = vector.load %arg3[%c0_11, %c0_12, %c0_13] : memref<3x8x4xf32, #tpu.memory_space<vmem>>, vector<1x8x4xf32>
    %37 = vector.shape_cast %36 : vector<1x8x4xf32> to vector<8x4xf32>
    %cst_14 = arith.constant dense<0.000000e+00> : vector<8x128xf32>
    %38 = tpu.matmul %37, %25, %cst_14 {dimension_numbers = #tpu.dot_dimension_numbers<[1], [0], [0], [1], [0, 0, 1, 1], [], []>} : vector<8x4xf32>, vector<4x128xf32>, vector<8x128xf32> -> vector<8x128xf32>
    %39 = arith.addf %35, %38 : vector<8x128xf32>
    %c2 = arith.constant 2 : index
    %c0_15 = arith.constant 0 : index
    %c0_16 = arith.constant 0 : index
    %40 = vector.load %arg3[%c2, %c0_15, %c0_16] : memref<3x8x4xf32, #tpu.memory_space<vmem>>, vector<1x8x4xf32>
    %41 = vector.shape_cast %40 : vector<1x8x4xf32> to vector<8x4xf32>
    %cst_17 = arith.constant dense<0.000000e+00> : vector<8x128xf32>
    %42 = tpu.matmul %41, %32, %cst_17 {dimension_numbers = #tpu.dot_dimension_numbers<[1], [0], [0], [1], [0, 0, 1, 1], [], []>} : vector<8x4xf32>, vector<4x128xf32>, vector<8x128xf32> -> vector<8x128xf32>
    %43 = arith.addf %39, %42 : vector<8x128xf32>
    %c0_18 = arith.constant 0 : index
    %c0_19 = arith.constant 0 : index
    %44 = vector.load %arg4[%c0_18, %c0_19] : memref<8x1xf32, #tpu.memory_space<vmem>>, vector<8x1xf32>
    %45 = vector.broadcast %44 : vector<8x1xf32> to vector<8x128xf32>
    %46 = arith.addf %43, %45 : vector<8x128xf32>
    %cst_20 = arith.constant 0.000000e+00 : f32
    %47 = vector.broadcast %cst_20 : f32 to vector<8x128xf32>
    %48 = arith.maximumf %46, %47 : vector<8x128xf32>
    %c0_21 = arith.constant 0 : index
    %c0_22 = arith.constant 0 : index
    %c0_23 = arith.constant 0 : index
    %49 = vector.load %arg5[%c0_21, %c0_22, %c0_23] : memref<1x8x128xf32, #tpu.memory_space<vmem>>, vector<1x8x128xf32>
    %50 = vector.shape_cast %49 : vector<1x8x128xf32> to vector<8x128xf32>
    %51 = vector.shape_cast %48 : vector<8x128xf32> to vector<1x8x128xf32>
    tpu.vector_store %arg5[%c0_21, %c0_22, %c0_23], %51 {strides = array<i32>} : memref<1x8x128xf32, #tpu.memory_space<vmem>>, vector<1x8x128xf32>,
    return
  }
  func.func @transform_0(%arg0: i32, %arg1: i32) -> (i32, i32, i32) {
    %c0_i32 = arith.constant 0 : i32
    %c0_i32_0 = arith.constant 0 : i32
    return %arg0, %c0_i32, %arg1 : i32, i32, i32
  }
  func.func @transform_1(%arg0: i32, %arg1: i32) -> (i32, i32, i32) {
    %c0_i32 = arith.constant 0 : i32
    %c0_i32_0 = arith.constant 0 : i32
    %c0_i32_1 = arith.constant 0 : i32
    %c0_i32_2 = arith.constant 0 : i32
    return %c0_i32, %c0_i32_0, %c0_i32_1 : i32, i32, i32
  }
  func.func @transform_2(%arg0: i32, %arg1: i32) -> (i32, i32) {
    %c0_i32 = arith.constant 0 : i32
    %c0_i32_0 = arith.constant 0 : i32
    %c0_i32_1 = arith.constant 0 : i32
    return %c0_i32, %c0_i32_0 : i32, i32
  }
  func.func @transform_3(%arg0: i32, %arg1: i32) -> (i32, i32, i32) {
    %c0_i32 = arith.constant 0 : i32
    %c0_i32_0 = arith.constant 0 : i32
    return %arg0, %c0_i32, %arg1 : i32, i32, i32
  }
}

</mosaic_0001>

<bundles_post_ra>
// kernel: tpu_custom_call.1
= control target key start
LH: loop header
LB: loop body
LE: loop exit
PB: predicated region body
PF: predicated region fallthrough
CT: control target
= control target key end

     0   :  { %8 = vsyncpa [#allocation3], 0  ;;  %s960_s0 = inlined_call_operand.vmem [shape: f32[2,4,256], index: 0, kind: input, shape index: {}]   ;;  %s961_s1 = inlined_call_operand.vmem [shape: f32[3,8,4], index: 1, kind: input, shape index: {}]   ;;  %s962_s2 = inlined_call_operand.vmem [shape: f32[8,1], index: 2, kind: input, shape index: {}]   ;;  %s963_s3 = inlined_call_operand.hbm [shape: f32[2,8,256], index: 3, kind: output, shape index: {}]  }
   0x1   :  { %10 = vsyncpa [#allocation3 + $0x1], 0  ;;  %s802_s12 = smov 0   ;;  %s804_s13 = smov 0  }
   0x2   :  { %s806_s14 = smov 0   ;;  %s808_s15 = smov 0  }
   0x3   :  { %s810_s16 = smov 0   ;;  %s812_s17 = smov 0  }
   0x4   :  { %s814_s18 = smov 0   ;;  %s816_s19 = smov 0  }
   0x5 LB: > { %s560_s20 = sadd.s32 4294967295, %s774_s19   ;;  %s561_s21 = sadd.s32 4294967294, %s774_s19   ;;  %s774_s19 = sphi %s816_s19, %s16_s19   ;;  %s770_s18 = sphi %s814_s18, %s972_s18   ;;  %s766_s17 = sphi %s812_s17, %s971_s17   ;;  %s762_s16 = sphi %s810_s16, %s970_s16   ;;  %s758_s15 = sphi %s808_s15, %s969_s15   ;;  %s754_s14 = sphi %s806_s14, %s968_s14   ;;  %s750_s13 = sphi %s804_s13, %s967_s13   ;;  %s746_s12 = sphi %s802_s12, %s966_s12  }
   0x6   : > { %s25_s22 = sadd.s32 1, %s766_s17  ;;  %s28_s23 = sadd.s32 1, %s770_s18 }
   0x7   : > { %p26_p0 = scmp.ge.s32.totalorder %s25_s22, 2  ;;  %p117_p1 = scmp.ne.s32.totalorder %s754_s14, %s750_s13 }
   0x8   : > { %p118_p2 = scmp.eq.s32.totalorder %s560_s20, 3  ;;  %p123_p5 = scmp.ne.s32.totalorder %s750_s13, %s746_s12 }
   0x9   : > { %s974_s22 = smov (%p26_p0, %s25_s22), 0  ;;  %s976_s23 = smov (!%p26_p0, %s28_s23), %s770_s18 }
   0xa   : > { %s103_s24 = ssub.s32 %s766_s17, %s974_s22  ;;  %p853_p3 = por %p118_p2, %p117_p1 }
   0xb   : > { %p30_p4 = scmp.ge.s32.totalorder %s976_s23, 2  ;;  %p124_p6 = scmp.eq.s32.totalorder %s561_s21, 3 }
   0xc   : > { %p564_p7 = scmp.ge.s32.totalorder %s774_s19, 1  ;;  %p159_p9 = scmp.lt.s32.totalorder %s774_s19, 5 }
   0xd   : > { %s978_s23 = smov (%p30_p4, %s976_s23), 0  ;;  %p862_p8 = por %p124_p6, %p123_p5 }
   0xe   : > { %s102_s27 = ssub.s32 %s770_s18, %s978_s23  ;;  %s107_s28 = sadd.s32 1, %s754_s14 }
   0xf   : > { %s104_s29 = sor.u32 %s103_s24, %s102_s27  ;;  %p160_p10 = pnand %p564_p7, %p159_p9 }
  0x10   : > { %p105_p11 = scmp.eq.s32.totalorder %s104_s29, 0  ;;  %p186_p12 = scmp.lt.s32.totalorder (!%p160_p10), %s762_s16, 1  ;;  %v776_v0 = vmov (!%p160_p10), 0.0   ;;  %vm777_vm0 = vmmov (!%p160_p10), 0   ;;  %v457_v1 = vld [vmem:[%s962_s2] sm:$0xff] (!%p160_p10)  ;;  %v778_v2 = vmov (!%p160_p10), 0   ;;  %v195_v5 = vlaneseq (!%p160_p10) }
  0x11   : > { %163 = sbr.rel (%p160_p10) target bundleno = 384 (0x180), region = 32  ;;  %p188_p13 = scmp.lt.s32.totalorder (!%p160_p10), %s758_s15, 1  ;;  %587 = vmatprep.subr.mxu0 (!%p160_p10), %v776_v0  ;;  %589 = vmatprep.mubr.msk.f32.mxu0 (!%p160_p10), %vm777_vm0, %v776_v0  ;;  %vm228_vm1 = vcmask (!%p160_p10), 1043456   ;;  %vm224_vm2 = vcmask (!%p160_p10), 31744   ;;  %v568_v3 = vld [vmem:[%s961_s1 + $0x8] sm:$0xff] (!%p160_p10)  ;;  %v223_v9 = vld [vmem:[%s961_s1] sm:$0xff] (!%p160_p10) }
  0x12   : > { %s871_s30 = scalar_select %p105_p11, %s754_s14, %s107_s28  }
  0x13   : > { %592 = vmatprep.subr.mxu1 (!%p160_p10), %v776_v0  ;;  %594 = vmatprep.mubr.msk.f32.mxu1 (!%p160_p10), %vm777_vm0, %v776_v0  ;;  %s779_s28 = smov (!%p160_p10), 1   ;;  %s780_s29 = smov (!%p160_p10), 127   ;;  %v196_v6 = vand.u32 (!%p160_p10), 127, %v195_v5  ;;  %v573_v12 = vld [vmem:[%s961_s1 + $0x10] sm:$0xff] (!%p160_p10) }
  0x14   : > { %678 = vset.pattern.permute.xlu1 (!%p160_p10), %v778_v2  ;;  %679 = vset.pattern.permute.xlu0 (!%p160_p10), %v778_v2 }
  0x15   : > { %460 = vperm.xlu1 (!%p160_p10), %678, %v457_v1   ;;  %v201_v7 = vand.u32 (!%p160_p10), 15, %v196_v6 }
  0x17   : > { %vm209_vm3 = vcmp.eq.s32.totalorder (!%p160_p10), %v201_v7, 0  ;;  %vm215_vm4 = vcmp.eq.s32.totalorder (!%p160_p10), %v201_v7, 15 }
  0x18   : > { %s187_s4 = scalar_select %p186_p12, %s762_s16, 1 }
  0x19   : > { %s189_s7 = scalar_select %p188_p13, %s758_s15, 1 }
  0x1a   : > { %s566_s8 = sshll.u32 %s187_s4, 1  ;;  %s781_s4 = smov [#allocation2]  }
  0x1b   : > { %s191_s9 = sadd.s32 %s566_s8, %s189_s7  ;;  %s183_s8 = sand.u32 1, %s750_s13  }
  0x1c   : > { %s567_s10 = sshll.u32 %s191_s9, 2  ;;  %s565_s9 = sshll.u32 %s183_s8, 3 }
  0x1d   : > { %s193_s21 = scalar_lea.vmem %s960_s0, %s567_s10  ;;  %s577_s10 = sshll.u32 %s762_s16, 1 }
  0x1e   : > { %v194_v4 = vld [vmem:[%s193_s21] sm:$0xf]  ;;  %s478_s11 = sadd.s32 %s758_s15, %s577_s10  ;;  %s185_s21 = scalar_lea.vmem [#allocation2], %s565_s9 }
  0x1f   : > { %210 = vrot.lane.b32.xlu0 %v194_v4, %s779_s28  ;;  %593 = vmatpush3.msk.msra.mxu1 %vm228_vm1, %v194_v4  ;;  %s578_s20 = sshll.u32 %s478_s11, 7  ;;  %s482_s24 = sshll.u32 %s185_s21, 4  ;;  %s909_s24 = int_to_ptr.vmem [resolvable:$true] %s482_s24 }
  0x20   : > { %595 = vmatmul.mubr.msk.f32.vlgmr.msra.gmra.mrb[0].mxu1 %vm224_vm2, %v568_v3  ;;  %s467_s15 = scalar_lea.sflag [#allocation3], %s183_s8  ;;  %s680_s16 = scalar_lea.vmem %s909_s24, 128 }
  0x21   : > { %p681_p0 = scmp.ne.s32.totalorder %s909_s24, %s680_s16  ;;  %s684_s5 = sshll.u32 %s781_s4, 4  ;;  %s685_s5 = int_to_ptr.vmem [resolvable:$false] %s684_s5 }
  0x22   : > { %s686_s6 = scalar_lea.vmem %s685_s5, 256  ;;  %p687_p4 = scmp.lt.s32.totalorder %s909_s24, %s685_s5 }
  0x23   : > { %216 = vrot.lane.b32.xlu0 %v194_v4, %s780_s29  ;;  %s907_s29 = scalar_lea.hbm %s963_s3, %s578_s20  ;;  %p682_p1 = pnand %p681_p0, %p853_p3 }
  0x24   : > { %p688_p5 = scmp.lt.s32.totalorder %s686_s6, %s680_s16 }
  0x25   : > { %p683_p2 = pneg %p682_p1 }
  0x26   : > { %p689_p6 = por %p688_p5, %p687_p4 }
  0x28   : > { %p690_p7 = pnand %p689_p6, %p683_p2 }
  0x91   : > { %v211_v8 = vpop.permute.xlu0 %210 }
  0x92   : > { %v214_v10 = vsel %vm209_vm3, 0.0, %v211_v8 }
  0x93   : > { %588 = vmatpush3.msk.msra.mxu0 %vm228_vm1, %v214_v10 }
  0x94   : > { %590 = vmatmul.mubr.msk.f32.vlgmr.msra.gmra.mrb[0].mxu0 %vm224_vm2, %v223_v9  ;;  %597 = vmatprep.subr.mxu0 %v776_v0  ;;  %v461_v20 = vpop.permute.xlu1 %460 }
  0x95   : > { %v217_v11 = vpop.permute.xlu0 %216  ;;  %599 = vmatprep.mubr.msk.f32.mxu0 %vm777_vm0, %v776_v0 }
  0x96   : > { %v220_v13 = vsel %vm215_vm4, 0.0, %v217_v11 }
  0x97   : > { %598 = vmatpush3.msk.msra.mxu0 %vm228_vm1, %v220_v13 }
  0x98   : > { %600 = vmatmul.mubr.msk.f32.vlgmr.msra.gmra.mrb[2].mxu0 %vm224_vm2, %v573_v12 }
  0xf3   : > { %v374_v14 = vpop.f32.mrb[0].mxu1 }
  0xf4   : > { %v596_v15 = vpop.f32.mrb[1].mxu1 }
 0x167   : > { %v298_v16 = vpop.f32.mrb[0].mxu0 }
 0x168   : > { %v591_v17 = vpop.f32.mrb[1].mxu0  ;;  %v375_v18 = vadd.f32 %v374_v14, %v298_v16 }
 0x16b   : > { %v452_v19 = vpop.f32.mrb[2].mxu0 }
 0x16c   : > { %v456_v21 = vadd.f32 %v452_v19, %v375_v18  ;;  %v601_v22 = vpop.f32.mrb[3].mxu0 }
 0x16e   : > { %v463_v23 = vadd.f32 %v461_v20, %v456_v21 }
 0x170   : > { %v464_v24 = vmax.f32 %v463_v23, 0.0 }
 0x172   : > { %465 = vst [vmem:[%s185_s21] sm:$0xff] %v464_v24 }
 0x173   : > { %693 = shalt.err (!%p690_p7)
}
 0x174   : > { %s694_s7 = scalar_lea.hbm %s907_s29, 128  ;;  %s698_s10 = scalar_lea.hbm %s963_s3, 512 }
 0x175   : > { %p695_p9 = scmp.ne.s32.totalorder %s907_s29, %s694_s7  ;;  %p699_p12 = scmp.lt.u32.totalorder %s907_s29, %s963_s3 }
 0x176   : > { %p700_p13 = scmp.lt.u32.totalorder %s698_s10, %s694_s7  ;;  %p702_p1 = scmp.lt.u32.totalorder %s694_s7, %s907_s29 }
 0x177   : > { %p696_p10 = pnand %p695_p9, %p853_p3 }
 0x178   : > { %p701_p0 = por %p700_p13, %p699_p12 }
 0x179   : > { %p697_p11 = pneg %p696_p10 }
 0x17a   : > { %p703_p2 = por %p702_p1, %p701_p0 }
 0x17c   : > { %p704_p4 = pnand %p703_p2, %p697_p11 }
 0x17e   : > { %707 = shalt.err (!%p704_p4)
}
 0x17f   : > { %602 = dma.vmem_to_hbm [thread:$0]  (%p853_p3), %s909_s24, 128, %s907_s29, %s467_s15  }
 0x180 PF: > { %p608_p5 = scmp.ge.s32.totalorder %s774_s19, 2  ;;  %s494_s21 = sand.u32 1, %s746_s12  }
 0x181   : > { %s495_s27 = scalar_lea.sflag [#allocation3], %s494_s21 }
 0x182   : > { %p605_p6 = pnand %p608_p5, %p862_p8 }
 0x184   : > { %741 = dma.done.wait (!%p605_p6), %s495_s27, 128  }
 0x185   : > { %743 = vsyncadd (!%p605_p6), %s495_s27, 4294967168  ;;  %s16_s19 = sadd.s32 1, %s774_s19   ;;  %s966_s12 = smov %s750_s13 }
 0x186   : > { %p13_p7 = scmp.ge.s32.totalorder %s16_s19, 6   ;;  %s967_s13 = smov %s754_s14 }
 0x187   : > { %s968_s14 = smov %s871_s30  ;;  %s969_s15 = smov %s766_s17 }
 0x188   : > { %s970_s16 = smov %s770_s18  ;;  %s971_s17 = smov %s974_s22 }
 0x189   : > { %s972_s18 = smov %s978_s23  ;;  %15 = sbr.rel (!%p13_p7) target bundleno = 5 (0x5), region = 69 }
 0x190   :  { %500 = vsyncpa [#allocation3], 1 }
 0x191   :  { %502 = vsyncpa [#allocation3 + $0x1], 1 }

</bundles_post_ra>
